<compile_context>
chip_gen: v7x
topology: tpu7x:2x2x1
jax: 0.10.0
libtpu: 0.0.40
codegen_flags: <defaults>
</compile_context>

<pallas_src>
import functools

import jax
import jax.numpy as jnp
from jax.experimental import pallas as pl
from jax.experimental.pallas import tpu as pltpu


def _dilated_conv_norm_kernel(x_ref, w_ref, b_ref, g_ref, be_ref, o_ref, *,
                              kSize, d, stride, groups, nIn, nOut, T_out, eps):
    # x_ref : (1, nIn, T_pad)            padded input sample
    # w_ref : (kSize, nOut, nIn//groups) conv weights (tap-major)
    # b_ref : (nOut, 1)                  conv bias
    # g_ref : (nOut, 1)                  GroupNorm weight (gamma)
    # be_ref: (nOut, 1)                  GroupNorm bias   (beta)
    # o_ref : (1, nOut, T_out)
    x = x_ref[0].astype(jnp.float32)                      # (nIn, T_pad)
    acc = jnp.zeros((nOut, T_out), jnp.float32)
    span = stride * (T_out - 1) + 1

    for k in range(kSize):                                # static unroll over taps
        start = k * d
        if stride == 1:
            x_k = x[:, start:start + T_out]               # (nIn, T_out)
        else:
            x_k = x[:, start:start + span:stride]         # (nIn, T_out)
        w_k = w_ref[k].astype(jnp.float32)                # (nOut, nIn//groups)

        if groups == 1:
            acc = acc + jnp.dot(w_k, x_k, preferred_element_type=jnp.float32)
        elif groups == nIn and nIn == nOut:
            # Depthwise: per-channel scalar times shifted row (VPU broadcast).
            acc = acc + w_k * x_k                         # (nOut,1)*(nOut,T_out)
        else:
            cin_g = nIn // groups
            cout_g = nOut // groups
            parts = [
                jnp.dot(w_k[g * cout_g:(g + 1) * cout_g, :],
                        x_k[g * cin_g:(g + 1) * cin_g, :],
                        preferred_element_type=jnp.float32)
                for g in range(groups)
            ]
            acc = acc + jnp.concatenate(parts, axis=0)

    acc = acc + b_ref[...].astype(jnp.float32)            # conv bias

    # GroupNorm with a single group: stats over all (C, T) of this sample.
    n = nOut * T_out
    mean = jnp.sum(acc) / n
    centered = acc - mean
    var = jnp.sum(centered * centered) / n
    inv = jax.lax.rsqrt(var + eps)
    y = centered * inv * g_ref[...].astype(jnp.float32) + be_ref[...].astype(jnp.float32)
    o_ref[0] = y.astype(o_ref.dtype)


def dilated_conv_norm(x, weight, bias, gamma, beta, *, kSize, stride=1, d=1,
                      groups=1, eps=1e-8):
    """Fused Conv1d(dilated) + GroupNorm(1) forward.

    x      : (B, nIn, T)
    weight : (nOut, nIn // groups, kSize)   (PyTorch Conv1d layout)
    bias   : (nOut,)
    gamma  : (nOut,)   GroupNorm weight
    beta   : (nOut,)   GroupNorm bias
    """
    B, nIn, T = x.shape
    nOut = weight.shape[0]
    pad = (kSize - 1) // 2 * d
    T_out = (T + 2 * pad - d * (kSize - 1) - 1) // stride + 1
    T_pad = T + 2 * pad

    # Glue: zero-pad time on the host side; reshape params for 2-D VMEM tiles.
    x_pad = jnp.pad(x, ((0, 0), (0, 0), (pad, pad)))
    w_t = jnp.transpose(weight, (2, 0, 1))                # (kSize, nOut, nIn//g)
    b2 = bias.reshape(nOut, 1).astype(jnp.float32)
    g2 = gamma.reshape(nOut, 1).astype(jnp.float32)
    be2 = beta.reshape(nOut, 1).astype(jnp.float32)

    kernel = functools.partial(
        _dilated_conv_norm_kernel, kSize=kSize, d=d, stride=stride,
        groups=groups, nIn=nIn, nOut=nOut, T_out=T_out, eps=eps)

    # Explicit VMEM budget: double-buffered in/out sample tiles + resident params.
    tile_bytes = 4 * (nIn * T_pad + nOut * T_out)
    const_bytes = 4 * (kSize * nOut * (nIn // groups) + 3 * nOut)
    vmem_limit = int(min(max(4 * tile_bytes + 2 * const_bytes + (4 << 20),
                             32 << 20), 96 << 20))

    return pl.pallas_call(
        kernel,
        out_shape=jax.ShapeDtypeStruct((B, nOut, T_out), x.dtype),
        grid=(B,),
        in_specs=[
            pl.BlockSpec((1, nIn, T_pad), lambda b: (b, 0, 0)),
            pl.BlockSpec((kSize, nOut, nIn // groups), lambda b: (0, 0, 0)),
            pl.BlockSpec((nOut, 1), lambda b: (0, 0)),
            pl.BlockSpec((nOut, 1), lambda b: (0, 0)),
            pl.BlockSpec((nOut, 1), lambda b: (0, 0)),
        ],
        out_specs=pl.BlockSpec((1, nOut, T_out), lambda b: (b, 0, 0)),
        compiler_params=pltpu.CompilerParams(
            dimension_semantics=("parallel",),
            vmem_limit_bytes=vmem_limit,
        ),
    )(x_pad, w_t, b2, g2, be2)


def _reference(x, weight, bias, gamma, beta, *, kSize, stride, d, groups, eps):
    pad = (kSize - 1) // 2 * d
    conv = jax.lax.conv_general_dilated(
        x, weight, window_strides=(stride,), padding=[(pad, pad)],
        rhs_dilation=(d,), dimension_numbers=("NCH", "OIH", "NCH"),
        feature_group_count=groups, precision=jax.lax.Precision.HIGHEST)
    conv = conv + bias[None, :, None]
    mean = conv.mean(axis=(1, 2), keepdims=True)
    var = ((conv - mean) ** 2).mean(axis=(1, 2), keepdims=True)
    return (conv - mean) / jnp.sqrt(var + eps) * gamma[None, :, None] \
        + beta[None, :, None]


if __name__ == "__main__":
    key = jax.random.PRNGKey(0)
    eps = 1e-8

    # --- Config 1: dense conv, dilation 2 (groups=1) ------------------------
    B, nIn, nOut, T = 2, 8, 8, 128
    kSize, stride, d, groups = 5, 1, 2, 1
    k1, k2, k3, k4, k5, key = jax.random.split(key, 6)
    x = jax.random.normal(k1, (B, nIn, T), dtype=jnp.float32)
    w = 0.1 * jax.random.normal(k2, (nOut, nIn // groups, kSize), dtype=jnp.float32)
    b = 0.1 * jax.random.normal(k3, (nOut,), dtype=jnp.float32)
    gamma = 1.0 + 0.1 * jax.random.normal(k4, (nOut,), dtype=jnp.float32)
    beta = 0.1 * jax.random.normal(k5, (nOut,), dtype=jnp.float32)

    out = jax.block_until_ready(dilated_conv_norm(
        x, w, b, gamma, beta, kSize=kSize, stride=stride, d=d, groups=groups,
        eps=eps))
    ref = _reference(x, w, b, gamma, beta, kSize=kSize, stride=stride, d=d,
                     groups=groups, eps=eps)
    assert out.shape == ref.shape and out.dtype == x.dtype
    assert jnp.allclose(out, ref, atol=2e-3, rtol=2e-3), \
        float(jnp.max(jnp.abs(out - ref)))

    # --- Config 2: depthwise conv (groups = nIn = nOut), as used in TDANet ---
    kSize2, stride2, d2, groups2 = 5, 1, 1, nIn
    k6, key = jax.random.split(key)
    w_dw = 0.2 * jax.random.normal(k6, (nOut, 1, kSize2), dtype=jnp.float32)

    out_dw = jax.block_until_ready(dilated_conv_norm(
        x, w_dw, b, gamma, beta, kSize=kSize2, stride=stride2, d=d2,
        groups=groups2, eps=eps))
    ref_dw = _reference(x, w_dw, b, gamma, beta, kSize=kSize2, stride=stride2,
                        d=d2, groups=groups2, eps=eps)
    assert out_dw.shape == ref_dw.shape
    assert jnp.allclose(out_dw, ref_dw, atol=2e-3, rtol=2e-3), \
        float(jnp.max(jnp.abs(out_dw - ref_dw)))

    print("KERNEL_OK")
</pallas_src>

<mosaic_0001>
module attributes {stable_mosaic.version = 11 : i64} {
  func.func @_dilated_conv_norm_kernel(%arg0: i32, %arg1: memref<1x8x136xf32, #tpu.memory_space<vmem>>, %arg2: memref<5x8x8xf32, #tpu.memory_space<vmem>>, %arg3: memref<8x1xf32, #tpu.memory_space<vmem>>, %arg4: memref<8x1xf32, #tpu.memory_space<vmem>>, %arg5: memref<8x1xf32, #tpu.memory_space<vmem>>, %arg6: memref<1x8x128xf32, #tpu.memory_space<vmem>>) attributes {dimension_semantics = [#tpu.dimension_semantics<parallel>], iteration_bounds = array<i64: 2>, scalar_prefetch = 0 : i64, scratch_operands = 0 : i64, tpu.core_type = #tpu.core_type<tc>, window_params = [{transform_indices = @transform_0, window_bounds = array<i64: 1, 8, 136>}, {pipeline_mode = #tpu.pipeline_mode<synchronous>, transform_indices = @transform_1, window_bounds = array<i64: 5, 8, 8>}, {pipeline_mode = #tpu.pipeline_mode<synchronous>, transform_indices = @transform_2, window_bounds = array<i64: 8, 1>}, {pipeline_mode = #tpu.pipeline_mode<synchronous>, transform_indices = @transform_3, window_bounds = array<i64: 8, 1>}, {pipeline_mode = #tpu.pipeline_mode<synchronous>, transform_indices = @transform_4, window_bounds = array<i64: 8, 1>}, {transform_indices = @transform_5, window_bounds = array<i64: 1, 8, 128>}]} {
    %c0 = arith.constant 0 : index
    %c0_0 = arith.constant 0 : index
    %c0_1 = arith.constant 0 : index
    %0 = vector.load %arg1[%c0, %c0_0, %c0_1] : memref<1x8x136xf32, #tpu.memory_space<vmem>>, vector<1x8x136xf32>
    %1 = vector.shape_cast %0 : vector<1x8x136xf32> to vector<8x136xf32>
    %cst = arith.constant 0.000000e+00 : f32
    %2 = vector.broadcast %cst : f32 to vector<8x128xf32>
    %3 = vector.extract_strided_slice %1 {offsets = [0, 0], sizes = [8, 128], strides = [1, 1]} : vector<8x136xf32> to vector<8x128xf32>
    %c0_2 = arith.constant 0 : index
    %c0_3 = arith.constant 0 : index
    %c0_4 = arith.constant 0 : index
    %4 = vector.load %arg2[%c0_2, %c0_3, %c0_4] : memref<5x8x8xf32, #tpu.memory_space<vmem>>, vector<1x8x8xf32>
    %5 = vector.shape_cast %4 : vector<1x8x8xf32> to vector<8x8xf32>
    %cst_5 = arith.constant dense<0.000000e+00> : vector<8x128xf32>
    %6 = tpu.matmul %5, %3, %cst_5 {dimension_numbers = #tpu.dot_dimension_numbers<[1], [0], [0], [1], [0, 0, 1, 1], [], []>} : vector<8x8xf32>, vector<8x128xf32>, vector<8x128xf32> -> vector<8x128xf32>
    %7 = arith.addf %2, %6 : vector<8x128xf32>
    %8 = vector.extract_strided_slice %1 {offsets = [0, 2], sizes = [8, 128], strides = [1, 1]} : vector<8x136xf32> to vector<8x128xf32>
    %c1 = arith.constant 1 : index
    %c0_6 = arith.constant 0 : index
    %c0_7 = arith.constant 0 : index
    %9 = vector.load %arg2[%c1, %c0_6, %c0_7] : memref<5x8x8xf32, #tpu.memory_space<vmem>>, vector<1x8x8xf32>
    %10 = vector.shape_cast %9 : vector<1x8x8xf32> to vector<8x8xf32>
    %cst_8 = arith.constant dense<0.000000e+00> : vector<8x128xf32>
    %11 = tpu.matmul %10, %8, %cst_8 {dimension_numbers = #tpu.dot_dimension_numbers<[1], [0], [0], [1], [0, 0, 1, 1], [], []>} : vector<8x8xf32>, vector<8x128xf32>, vector<8x128xf32> -> vector<8x128xf32>
    %12 = arith.addf %7, %11 : vector<8x128xf32>
    %13 = vector.extract_strided_slice %1 {offsets = [0, 4], sizes = [8, 128], strides = [1, 1]} : vector<8x136xf32> to vector<8x128xf32>
    %c2 = arith.constant 2 : index
    %c0_9 = arith.constant 0 : index
    %c0_10 = arith.constant 0 : index
    %14 = vector.load %arg2[%c2, %c0_9, %c0_10] : memref<5x8x8xf32, #tpu.memory_space<vmem>>, vector<1x8x8xf32>
    %15 = vector.shape_cast %14 : vector<1x8x8xf32> to vector<8x8xf32>
    %cst_11 = arith.constant dense<0.000000e+00> : vector<8x128xf32>
    %16 = tpu.matmul %15, %13, %cst_11 {dimension_numbers = #tpu.dot_dimension_numbers<[1], [0], [0], [1], [0, 0, 1, 1], [], []>} : vector<8x8xf32>, vector<8x128xf32>, vector<8x128xf32> -> vector<8x128xf32>
    %17 = arith.addf %12, %16 : vector<8x128xf32>
    %18 = vector.extract_strided_slice %1 {offsets = [0, 6], sizes = [8, 128], strides = [1, 1]} : vector<8x136xf32> to vector<8x128xf32>
    %c3 = arith.constant 3 : index
    %c0_12 = arith.constant 0 : index
    %c0_13 = arith.constant 0 : index
    %19 = vector.load %arg2[%c3, %c0_12, %c0_13] : memref<5x8x8xf32, #tpu.memory_space<vmem>>, vector<1x8x8xf32>
    %20 = vector.shape_cast %19 : vector<1x8x8xf32> to vector<8x8xf32>
    %cst_14 = arith.constant dense<0.000000e+00> : vector<8x128xf32>
    %21 = tpu.matmul %20, %18, %cst_14 {dimension_numbers = #tpu.dot_dimension_numbers<[1], [0], [0], [1], [0, 0, 1, 1], [], []>} : vector<8x8xf32>, vector<8x128xf32>, vector<8x128xf32> -> vector<8x128xf32>
    %22 = arith.addf %17, %21 : vector<8x128xf32>
    %23 = vector.extract_strided_slice %1 {offsets = [0, 8], sizes = [8, 128], strides = [1, 1]} : vector<8x136xf32> to vector<8x128xf32>
    %c4 = arith.constant 4 : index
    %c0_15 = arith.constant 0 : index
    %c0_16 = arith.constant 0 : index
    %24 = vector.load %arg2[%c4, %c0_15, %c0_16] : memref<5x8x8xf32, #tpu.memory_space<vmem>>, vector<1x8x8xf32>
    %25 = vector.shape_cast %24 : vector<1x8x8xf32> to vector<8x8xf32>
    %cst_17 = arith.constant dense<0.000000e+00> : vector<8x128xf32>
    %26 = tpu.matmul %25, %23, %cst_17 {dimension_numbers = #tpu.dot_dimension_numbers<[1], [0], [0], [1], [0, 0, 1, 1], [], []>} : vector<8x8xf32>, vector<8x128xf32>, vector<8x128xf32> -> vector<8x128xf32>
    %27 = arith.addf %22, %26 : vector<8x128xf32>
    %c0_18 = arith.constant 0 : index
    %c0_19 = arith.constant 0 : index
    %28 = vector.load %arg3[%c0_18, %c0_19] : memref<8x1xf32, #tpu.memory_space<vmem>>, vector<8x1xf32>
    %29 = vector.broadcast %28 : vector<8x1xf32> to vector<8x128xf32>
    %30 = arith.addf %27, %29 : vector<8x128xf32>
    %31 = vector.shape_cast %30 : vector<8x128xf32> to vector<1x8x128xf32>
    %cst_20 = arith.constant dense<0.000000e+00> : vector<1xf32>
    %32 = vector.multi_reduction <add>, %31, %cst_20 [1, 2] : vector<1x8x128xf32> to vector<1xf32>
    %33 = vector.shape_cast %32 : vector<1xf32> to vector<1x1x1xf32>
    %34 = vector.extract %33[0, 0, 0] : f32 from vector<1x1x1xf32>
    %cst_21 = arith.constant 1.024000e+03 : f32
    %35 = arith.divf %34, %cst_21 : f32
    %36 = vector.broadcast %35 : f32 to vector<8x128xf32>
    %37 = arith.subf %30, %36 : vector<8x128xf32>
    %38 = arith.mulf %37, %37 : vector<8x128xf32>
    %39 = vector.shape_cast %38 : vector<8x128xf32> to vector<1x8x128xf32>
    %cst_22 = arith.constant dense<0.000000e+00> : vector<1xf32>
    %40 = vector.multi_reduction <add>, %39, %cst_22 [1, 2] : vector<1x8x128xf32> to vector<1xf32>
    %41 = vector.shape_cast %40 : vector<1xf32> to vector<1x1x1xf32>
    %42 = vector.extract %41[0, 0, 0] : f32 from vector<1x1x1xf32>
    %cst_23 = arith.constant 1.024000e+03 : f32
    %43 = arith.divf %42, %cst_23 : f32
    %cst_24 = arith.constant 9.99999993E-9 : f32
    %44 = arith.addf %43, %cst_24 : f32
    %45 = math.rsqrt %44 : f32
    %46 = vector.broadcast %45 : f32 to vector<8x128xf32>
    %47 = arith.mulf %37, %46 : vector<8x128xf32>
    %c0_25 = arith.constant 0 : index
    %c0_26 = arith.constant 0 : index
    %48 = vector.load %arg4[%c0_25, %c0_26] : memref<8x1xf32, #tpu.memory_space<vmem>>, vector<8x1xf32>
    %49 = vector.broadcast %48 : vector<8x1xf32> to vector<8x128xf32>
    %50 = arith.mulf %47, %49 : vector<8x128xf32>
    %c0_27 = arith.constant 0 : index
    %c0_28 = arith.constant 0 : index
    %51 = vector.load %arg5[%c0_27, %c0_28] : memref<8x1xf32, #tpu.memory_space<vmem>>, vector<8x1xf32>
    %52 = vector.broadcast %51 : vector<8x1xf32> to vector<8x128xf32>
    %53 = arith.addf %50, %52 : vector<8x128xf32>
    %c0_29 = arith.constant 0 : index
    %c0_30 = arith.constant 0 : index
    %c0_31 = arith.constant 0 : index
    %54 = vector.load %arg6[%c0_29, %c0_30, %c0_31] : memref<1x8x128xf32, #tpu.memory_space<vmem>>, vector<1x8x128xf32>
    %55 = vector.shape_cast %54 : vector<1x8x128xf32> to vector<8x128xf32>
    %56 = vector.shape_cast %53 : vector<8x128xf32> to vector<1x8x128xf32>
    tpu.vector_store %arg6[%c0_29, %c0_30, %c0_31], %56 {strides = array<i32>} : memref<1x8x128xf32, #tpu.memory_space<vmem>>, vector<1x8x128xf32>,
    return
  }
  func.func @transform_0(%arg0: i32) -> (i32, i32, i32) {
    %c0_i32 = arith.constant 0 : i32
    %c0_i32_0 = arith.constant 0 : i32
    %c0_i32_1 = arith.constant 0 : i32
    return %arg0, %c0_i32, %c0_i32_0 : i32, i32, i32
  }
  func.func @transform_1(%arg0: i32) -> (i32, i32, i32) {
    %c0_i32 = arith.constant 0 : i32
    %c0_i32_0 = arith.constant 0 : i32
    %c0_i32_1 = arith.constant 0 : i32
    %c0_i32_2 = arith.constant 0 : i32
    return %c0_i32, %c0_i32_0, %c0_i32_1 : i32, i32, i32
  }
  func.func @transform_2(%arg0: i32) -> (i32, i32) {
    %c0_i32 = arith.constant 0 : i32
    %c0_i32_0 = arith.constant 0 : i32
    %c0_i32_1 = arith.constant 0 : i32
    return %c0_i32, %c0_i32_0 : i32, i32
  }
  func.func @transform_3(%arg0: i32) -> (i32, i32) {
    %c0_i32 = arith.constant 0 : i32
    %c0_i32_0 = arith.constant 0 : i32
    %c0_i32_1 = arith.constant 0 : i32
    return %c0_i32, %c0_i32_0 : i32, i32
  }
  func.func @transform_4(%arg0: i32) -> (i32, i32) {
    %c0_i32 = arith.constant 0 : i32
    %c0_i32_0 = arith.constant 0 : i32
    %c0_i32_1 = arith.constant 0 : i32
    return %c0_i32, %c0_i32_0 : i32, i32
  }
  func.func @transform_5(%arg0: i32) -> (i32, i32, i32) {
    %c0_i32 = arith.constant 0 : i32
    %c0_i32_0 = arith.constant 0 : i32
    %c0_i32_1 = arith.constant 0 : i32
    return %arg0, %c0_i32, %c0_i32_0 : i32, i32, i32
  }
}

</mosaic_0001>

<bundles_post_ra>
// kernel: tpu_custom_call.1
= control target key start
LH: loop header
LB: loop body
LE: loop exit
PB: predicated region body
PF: predicated region fallthrough
CT: control target
= control target key end

     0   :  { %10 = vsyncpa [#allocation3], 0  ;;  %s1335_s0 = inlined_call_operand.hbm [shape: f32[2,8,136], index: 0, kind: input, shape index: {}]   ;;  %s1336_s1 = inlined_call_operand.hbm [shape: f32[5,8,8], index: 1, kind: input, shape index: {}]   ;;  %s1337_s2 = inlined_call_operand.vmem [shape: f32[8,1], index: 2, kind: input, shape index: {}]   ;;  %s1338_s3 = inlined_call_operand.vmem [shape: f32[8,1], index: 3, kind: input, shape index: {}]   ;;  %s1339_s4 = inlined_call_operand.vmem [shape: f32[8,1], index: 4, kind: input, shape index: {}]   ;;  %s1340_s5 = inlined_call_operand.hbm [shape: f32[2,8,128], index: 5, kind: output, shape index: {}]  }
   0x1   :  { %12 = vsyncpa [#allocation3 + $0x1], 0 }
   0x2   :  { %13 = vsyncpa [#allocation6], 0 }
   0x3   :  { %14 = vsyncpa [#allocation4], 0 }
   0x4   :  { %16 = vsyncpa [#allocation4 + $0x1], 0  ;;  %s1119_s18 = smov 0   ;;  %s1121_s19 = smov 0  }
   0x5   :  { %s1123_s20 = smov 0   ;;  %s1125_s21 = smov 0  }
   0x6 LB: > { %s1140_s22 = sadd.s32 4294967295, %s1075_s21   ;;  %s815_s23 = sadd.s32 4294967294, %s1075_s21   ;;  %s1075_s21 = sphi %s1125_s21, %s1360_s21   ;;  %s1071_s20 = sphi %s1123_s20, %s1359_s20   ;;  %s1067_s19 = sphi %s1121_s19, %s1358_s19   ;;  %s1063_s18 = sphi %s1119_s18, %s1357_s18  }
   0x7   : > { %p42_p0 = scmp.ne.s32.totalorder %s1067_s19, %s1063_s18  ;;  %p1341_p1 = scmp.eq.s32.totalorder %s1140_s22, 0 }
   0x8   : > { %p156_p3 = scmp.eq.s32.totalorder %s815_s23, 1  ;;  %p816_p5 = scmp.ge.s32.totalorder %s1075_s21, 1 }
   0x9   : > { %p1149_p4 = por %p1341_p1, %p42_p0  ;;  %p163_p7 = scmp.lt.s32.totalorder %s1075_s21, 3 }
   0xa   : > { %p1154_p6 = por %p156_p3, %p42_p0  ;;  %s1077_s27 = smov [#allocation5]  }
   0xb   : > { %s1344_s24 = scalar_select %p1149_p4, 1, 0 }
   0xc   : > { %s1345_s25 = scalar_select %p1154_p6, 1, 0 }
   0xd   : > { %p1159_p8 = pnand %p816_p5, %p163_p7  ;;  %s175_s28 = sshll.u32 %s1077_s27, 4  ;;  %s1163_s28 = int_to_ptr.vmem [resolvable:$true] %s175_s28 }
   0xe   : > { %s1175_s30 = sadd.s32 1, %s1075_s21   ;;  %s29_s6 = sadd.s32 1, %s1071_s20 }
   0xf   : > { %s1346_s26 = scalar_select %p1159_p8, 1, 0 }
  0x10   : > { %p885_p9 = pneg %p1159_p8  ;;  %s26_s7 = ssub.s32 %s1075_s21, %s1175_s30 }
  0x11   : > { %s947_s10 = scalar_lea.hbm %s1336_s1, 640 }
  0x12   : > { %p1170_p11 = pnand %p885_p9, %p1341_p1  ;;  %p948_p12 = scmp.ne.s32.totalorder %s1336_s1, %s947_s10 }
  0x13   : > { %p954_p5 = scmp.lt.u32.totalorder %s947_s10, %s1336_s1 }
  0x14   : > { %p949_p13 = pneg %p1170_p11 }
  0x16   : > { %p950_p0 = pnand %p949_p13, %p948_p12 }
  0x18   : > { %p951_p3 = pneg %p950_p0 }
  0x1a   : > { %p956_p7 = pnand %p954_p5, %p951_p3 }
  0x1c   : > { %959 = shalt.err (!%p956_p7)
}
  0x1d   : > { %s960_s15 = scalar_lea.vmem %s1163_s28, 640  ;;  %p968_p2 = scmp.lt.s32.totalorder %s1163_s28, %s1163_s28 }
  0x1e   : > { %p961_p9 = scmp.ne.s32.totalorder %s1163_s28, %s960_s15  ;;  %p969_p6 = scmp.lt.s32.totalorder %s960_s15, %s960_s15 }
  0x20   : > { %p963_p10 = pnand %p961_p9, %p949_p13  ;;  %p970_p4 = por %p969_p6, %p968_p2 }
  0x22   : > { %p964_p1 = pneg %p963_p10 }
  0x24   : > { %p971_p8 = pnand %p970_p4, %p964_p1 }
  0x26   : > { %974 = shalt.err (!%p971_p8)
}
  0x27   : > { %s1078_s16 = smov 128   ;;  %s1079_s17 = smov 8  }
  0x28   : > { %888 = dma.hbm_to_vmem [thread:$0]  (!%p1170_p11), %s1336_s1, 640, %s1163_s28, [#allocation6], %s1078_s16, %s1078_s16, %s1079_s17  }
  0x29   : > { %p27_p2 = scmp.eq.s32.totalorder %s26_s7, 0  ;;  %p36_p1 = scmp.ne.s32.totalorder %s1071_s20, %s1067_s19 }
  0x2a   : > { %p37_p4 = scmp.eq.s32.totalorder %s1075_s21, 0  ;;  %p898_p6 = scmp.lt.s32.totalorder %s1075_s21, 2 }
  0x2b   : > { %s1206_s8 = scalar_select %p27_p2, %s1071_s20, %s29_s6  }
  0x2c   : > { %p38_p8 = por %p37_p4, %p36_p1  ;;  %p1348_p10 = scmp.eq.s32.totalorder %s1140_s22, 1 }
  0x2d   : > { %s198_s10 = sand.u32 1, %s1071_s20   ;;  %s835_s11 = sshll.u32 %s1075_s21, 8 }
  0x2e   : > { %p1210_p12 = por %p1348_p10, %p36_p1  ;;  %s819_s12 = sshll.u32 %s198_s10, 4 }
  0x2f   : > { %s1219_s14 = scalar_lea.hbm %s1335_s0, %s835_s11  ;;  %s202_s28 = scalar_lea.vmem [#allocation2], %s819_s12 }
  0x30   : > { %s210_s6 = sshll.u32 %s202_s28, 4  ;;  %p1221_p11 = pnand %p898_p6, %p38_p8  ;;  %s1225_s6 = int_to_ptr.vmem [resolvable:$true] %s210_s6 }
  0x31   : > { %s199_s15 = scalar_lea.sflag [#allocation3], %s198_s10  ;;  %s975_s16 = scalar_lea.hbm %s1219_s14, 256 }
  0x32   : > { %p976_p13 = scmp.ne.s32.totalorder %s1219_s14, %s975_s16  ;;  %p977_p0 = pneg %p1221_p11 }
  0x33   : > { %s980_s27 = scalar_lea.hbm %s1335_s0, 512  ;;  %p981_p7 = scmp.lt.u32.totalorder %s1219_s14, %s1335_s0 }
  0x34   : > { %p978_p3 = pnand %p977_p0, %p976_p13  ;;  %p982_p9 = scmp.lt.u32.totalorder %s980_s27, %s975_s16 }
  0x35   : > { %p984_p1 = scmp.lt.u32.totalorder %s975_s16, %s1219_s14 }
  0x36   : > { %p979_p5 = pneg %p978_p3  ;;  %p983_p2 = por %p982_p9, %p981_p7 }
  0x38   : > { %p985_p4 = por %p984_p1, %p983_p2 }
  0x3a   : > { %p986_p6 = pnand %p985_p4, %p979_p5 }
  0x3c   : > { %989 = shalt.err (!%p986_p6)
}
  0x3d   : > { %s990_s10 = scalar_lea.vmem %s1225_s6, 256  ;;  %s1080_s29 = smov [#allocation2]  }
  0x3e   : > { %p991_p8 = scmp.ne.s32.totalorder %s1225_s6, %s990_s10  ;;  %s995_s13 = sshll.u32 %s1080_s29, 4  ;;  %s996_s13 = int_to_ptr.vmem [resolvable:$false] %s995_s13 }
  0x3f   : > { %s997_s28 = scalar_lea.vmem %s996_s13, 512  ;;  %p998_p3 = scmp.lt.s32.totalorder %s1225_s6, %s996_s13 }
  0x40   : > { %p993_p10 = pnand %p991_p8, %p977_p0  ;;  %p999_p7 = scmp.lt.s32.totalorder %s997_s28, %s990_s10 }
  0x42   : > { %p994_p13 = pneg %p993_p10  ;;  %p1000_p9 = por %p999_p7, %p998_p3 }
  0x44   : > { %p1001_p2 = pnand %p1000_p9, %p994_p13 }
  0x46   : > { %1004 = shalt.err (!%p1001_p2)
}
  0x47   : > { %892 = dma.hbm_to_vmem [thread:$0]  (!%p1221_p11), %s1219_s14, 256, %s1225_s6, %s199_s15  }
  0x48   : > { %p1351_p5 = scmp.ne.s32.totalorder %s1346_s26, 0 }
  0x49   : > { %s1255_s16 = sand.u32 (!%p1351_p5), 1, %s1067_s19   ;;  %p1352_p0 = scmp.ne.s32.totalorder (!%p1351_p5), %s1344_s24, 0 }
  0x4a   : > { %219 = sbr.rel (%p1351_p5) target bundleno = 935 (0x3a7), region = 40  ;;  %s823_s17 = sshll.u32 (!%p1351_p5), %s1255_s16, 4 }
  0x4b   : > { %s222_s23 = scalar_lea.sflag (!%p1351_p5), [#allocation3], %s1255_s16  ;;  %s225_s27 = scalar_lea.vmem (!%p1351_p5), [#allocation2], %s823_s17 }
  0x51   : > { %1050 = dma.done.wait (%p1352_p0), %s222_s23, 256  }
  0x52   : > { %1052 = vsyncadd (%p1352_p0), %s222_s23, 4294967040  ;;  %p1353_p1 = scmp.eq.s32.totalorder %s1140_s22, 0 }
  0x54   : > { %1054 = dma.done.wait (%p1353_p1), [#allocation6], 640   ;;  %p1354_p11 = pmov %p1353_p1 }
  0x55   : > { %v1081_v0 = vmov 0.0   ;;  %vm1082_vm0 = vmmov 0   ;;  %v256_v1 = vld [vmem:[%s225_s27] sm:$0xff]  ;;  %vm270_vm1 = vcmask 64512   ;;  %s1083_s26 = smov 124   ;;  %s1084_s24 = smov 126  }
  0x56   : > { %1056 = vsyncadd (%p1354_p11), [#allocation6], 4294966656  ;;  %846 = vmatprep.subr.mxu0 %v1081_v0  ;;  %851 = vmatprep.subr.mxu1 %v1081_v0  ;;  %v258_v2 = vld [vmem:[#allocation5] sm:$0xff]  ;;  %v257_v3 = vld [vmem:[%s225_s27 + $0x8] sm:$0xff]  ;;  %v1085_v4 = vmov 0   ;;  %s1086_s14 = smov 122  }
  0x57   : > { %848 = vmatprep.mubr.msk.f32.mxu0 %vm1082_vm0, %v1081_v0  ;;  %853 = vmatprep.mubr.msk.f32.mxu1 %vm1082_vm0, %v1081_v0  ;;  %s1087_s6 = smov 120   ;;  %v666_v5 = vld [vmem:[%s1337_s2] sm:$0xff]  ;;  %vm267_vm2 = vcmask 1031168   ;;  %vm423_vm3 = vcmask 1014784   ;;  %v260_v10 = vld [vmem:[#allocation5 + $0x8] sm:$0xff]  ;;  %vm506_vm4 = vcmask 998400  }
  0x58   : > { %419 = vrot.lane.b32.xlu1 %v256_v1, %s1083_s26  ;;  %263 = vrot.lane.b32.xlu0 %v256_v1, %s1084_s24  ;;  %v418_v15 = vld [vmem:[#allocation5 + $0x10] sm:$0xff]  ;;  %v501_v16 = vld [vmem:[#allocation5 + $0x18] sm:$0xff]  ;;  %vm589_vm5 = vcmask 982016   ;;  %v584_v20 = vld [vmem:[#allocation5 + $0x20] sm:$0xff]  ;;  %s722_s10 = scalar_lea.sflag [#allocation4], %s1255_s16 }
  0x59   : > { %852 = vmatpush3.msra.mxu1 %v256_v1  ;;  %943 = vset.pattern.permute.xlu0 %v1085_v4  ;;  %v706_v48 = vld [vmem:[%s1338_s3] sm:$0xff] }
  0x5a   : > { %854 = vmatmul.mubr.msk.f32.vlgmr.msra.gmra.mrb[0].mxu1 %vm270_vm1, %v258_v2  ;;  %861 = vmatprep.subr.mxu1 %v1081_v0  ;;  %v713_v49 = vld [vmem:[%s1339_s4] sm:$0xff] }
  0x5b   : > { %863 = vmatprep.mubr.msk.f32.mxu1 %vm1082_vm0, %v1081_v0  ;;  %944 = vset.pattern.permute.xlu1 %v1085_v4 }
  0x5c   : > { %421 = vrot.lane.b32.xlu1 %v257_v3, %s1083_s26  ;;  %265 = vrot.lane.b32.xlu0 %v257_v3, %s1084_s24  ;;  %s825_s26 = sshll.u32 %s1255_s16, 3 }
  0x60   : > { %504 = vrot.lane.b32.xlu1 %v257_v3, %s1086_s14  ;;  %502 = vrot.lane.b32.xlu0 %v256_v1, %s1086_s14  ;;  %s832_s14 = sshll.u32 %s1140_s22, 7  ;;  %s1088_s22 = smov [#allocation7]  }
  0x61   : > { %s1009_s13 = sshll.u32 %s1088_s22, 4  ;;  %s1010_s13 = int_to_ptr.vmem [resolvable:$false] %s1009_s13 }
  0x62   : > { %s1011_s28 = scalar_lea.vmem %s1010_s13, 256 }
  0x64   : > { %587 = vrot.lane.b32.xlu1 %v257_v3, %s1087_s6  ;;  %585 = vrot.lane.b32.xlu0 %v256_v1, %s1087_s6  ;;  %s255_s6 = scalar_lea.vmem [#allocation7], %s825_s26 }
  0x65   : > { %s735_s7 = sshll.u32 %s255_s6, 4  ;;  %s1293_s7 = int_to_ptr.vmem [resolvable:$true] %s735_s7 }
  0x66   : > { %s1005_s29 = scalar_lea.vmem %s1293_s7, 128  ;;  %p1012_p10 = scmp.lt.s32.totalorder %s1293_s7, %s1010_s13 }
  0x67   : > { %p1006_p4 = scmp.ne.s32.totalorder %s1293_s7, %s1005_s29  ;;  %p1013_p13 = scmp.lt.s32.totalorder %s1011_s28, %s1005_s29 }
  0x68   : > { %669 = vperm.xlu0 %943, %v666_v5  }
  0x69   : > { %p1007_p6 = pnand %p1006_p4, %p1210_p12  ;;  %p1014_p3 = por %p1013_p13, %p1012_p10 }
  0x6b   : > { %p1008_p8 = pneg %p1007_p6 }
  0x6d   : > { %p1015_p7 = pnand %p1014_p3, %p1008_p8 }
  0xca   : > { %v420_v6 = vpop.permute.xlu1 %419  ;;  %v264_v7 = vpop.permute.xlu0 %263 }
  0xce   : > { %v422_v8 = vpop.permute.xlu1 %421  ;;  %v266_v9 = vpop.permute.xlu0 %265 }
  0xcf   : > { %v268_v11 = vsel %vm267_vm2, %v264_v7, %v266_v9  ;;  %v424_v12 = vsel %vm423_vm3, %v420_v6, %v422_v8 }
  0xd0   : > { %847 = vmatpush3.msra.mxu0 %v268_v11 }
  0xd1   : > { %849 = vmatmul.mubr.msk.f32.vlgmr.msra.gmra.mrb[0].mxu0 %vm270_vm1, %v260_v10  ;;  %856 = vmatprep.subr.mxu0 %v1081_v0 }
  0xd2   : > { %v505_v13 = vpop.permute.xlu1 %504  ;;  %857 = vmatpush3.msra.mxu0 %v424_v12  ;;  %v503_v14 = vpop.permute.xlu0 %502  ;;  %858 = vmatprep.mubr.msk.f32.mxu0 %vm1082_vm0, %v1081_v0 }
  0xd3   : > { %v507_v17 = vsel %vm506_vm4, %v503_v14, %v505_v13  ;;  %866 = vmatprep.subr.mxu0 %v1081_v0 }
  0xd4   : > { %862 = vmatpush3.msra.mxu1 %v507_v17 }
  0xd5   : > { %859 = vmatmul.mubr.msk.f32.vlgmr.msra.gmra.mrb[2].mxu0 %vm270_vm1, %v418_v15  ;;  %864 = vmatmul.mubr.msk.f32.vlgmr.msra.gmra.mrb[2].mxu1 %vm270_vm1, %v501_v16 }
  0xd6   : > { %v588_v18 = vpop.permute.xlu1 %587  ;;  %v586_v19 = vpop.permute.xlu0 %585  ;;  %868 = vmatprep.mubr.msk.f32.mxu0 %vm1082_vm0, %v1081_v0 }
  0xd7   : > { %v590_v21 = vsel %vm589_vm5, %v586_v19, %v588_v18 }
  0xd8   : > { %867 = vmatpush3.msra.mxu0 %v590_v21 }
  0xd9   : > { %869 = vmatmul.mubr.msk.f32.vlgmr.msra.gmra.mrb[4].mxu0 %vm270_vm1, %v584_v20 }
  0xe7   : > { %v670_v34 = vpop.permute.xlu0 %669 }
 0x12d   : > { %v413_v22 = vpop.f32.mrb[0].mxu1 }
 0x12e   : > { %v855_v23 = vpop.f32.mrb[1].mxu1 }
 0x1a4   : > { %v340_v24 = vpop.f32.mrb[0].mxu0 }
 0x1a5   : > { %v414_v25 = vadd.f32 %v413_v22, %v340_v24  ;;  %v850_v26 = vpop.f32.mrb[1].mxu0 }
 0x1a8   : > { %v495_v27 = vpop.f32.mrb[2].mxu0  ;;  %v578_v28 = vpop.f32.mrb[2].mxu1 }
 0x1a9   : > { %v499_v29 = vadd.f32 %v495_v27, %v414_v25  ;;  %v860_v30 = vpop.f32.mrb[3].mxu0  ;;  %v865_v31 = vpop.f32.mrb[3].mxu1 }
 0x1ab   : > { %v582_v32 = vadd.f32 %v578_v28, %v499_v29 }
 0x1ac   : > { %v661_v33 = vpop.f32.mrb[4].mxu0 }
 0x1ad   : > { %v665_v35 = vadd.f32 %v661_v33, %v582_v32  ;;  %v870_v36 = vpop.f32.mrb[5].mxu0 }
 0x1af   : > { %v672_v37 = vadd.f32 %v670_v34, %v665_v35 }
 0x1b1   : > { %673 = vadd.xlane.f32.xlu1 %v672_v37 }
 0x1c2   : > { %709 = vperm.xlu1 %944, %v706_v48  }
 0x23e   : > { %v674_v38 = vpop.xlane.xlu1 %673 }
 0x23f   : > { %v675_v39 = vrot.slane %v674_v38, 4 }
 0x241   : > { %v676_v40 = vadd.f32 %v675_v39, %v674_v38 }
 0x242   : > { %v710_v60 = vpop.permute.xlu1 %709 }
 0x243   : > { %v677_v41 = vrot.slane %v676_v40, 2 }
 0x245   : > { %v678_v42 = vadd.f32 %v677_v41, %v676_v40 }
 0x247   : > { %v679_v43 = vrot.slane %v678_v42, 1 }
 0x249   : > { %v680_v44 = vadd.f32 %v679_v43, %v678_v42 }
 0x24b   : > { %871 = vpush %v680_v44 }
 0x27c   : > { %s872_s11 = spop %871 }
 0x27d   : > { %s684_s12 = smul.f32 0.0009765625, %s872_s11 }
 0x27f   : > { %v685_v45 = vstv %s684_s12  ;;  %s1291_s12 = scalar_lea.hbm %s1340_s5, %s832_s14 }
 0x280   : > { %v686_v46 = vsub.f32 %v672_v37, %v685_v45 }
 0x282   : > { %v687_v47 = vmul.f32 %v686_v46, %v686_v46 }
 0x284   : > { %688 = vadd.xlane.f32.xlu0 %v687_v47 }
 0x29a   : > { %716 = vperm.xlu0 %943, %v713_v49  }
 0x311   : > { %v689_v50 = vpop.xlane.xlu0 %688 }
 0x312   : > { %v690_v51 = vrot.slane %v689_v50, 4 }
 0x314   : > { %v691_v52 = vadd.f32 %v690_v51, %v689_v50 }
 0x316   : > { %v692_v53 = vrot.slane %v691_v52, 2 }
 0x318   : > { %v693_v54 = vadd.f32 %v692_v53, %v691_v52 }
 0x319   : > { %v717_v63 = vpop.permute.xlu0 %716 }
 0x31a   : > { %v694_v55 = vrot.slane %v693_v54, 1 }
 0x31c   : > { %v695_v56 = vadd.f32 %v694_v55, %v693_v54 }
 0x31e   : > { %873 = vpush %v695_v56 }
 0x34f   : > { %s874_s17 = spop %873 }
 0x350   : > { %s699_s23 = smul.f32 0.0009765625, %s874_s17 }
 0x352   : > { %s700_s27 = sadd.f32 1e-08, %s699_s23 }
 0x354   : > { %v701_v57 = vstv %s700_s27 }
 0x355   : > { %945 = vrsqrt.f32 %v701_v57 }
 0x35f   : > { %v946_v58 = vpop.eup %945 }
 0x360   : > { %875 = vpush %v946_v58 }
 0x391   : > { %s876_s24 = spop %875 }
 0x392   : > { %v704_v59 = vstv %s876_s24 }
 0x393   : > { %v705_v61 = vmul.f32 %v704_v59, %v686_v46 }
 0x395   : > { %v712_v62 = vmul.f32 %v710_v60, %v705_v61 }
 0x397   : > { %v719_v0 = vadd.f32 %v717_v63, %v712_v62 }
 0x399   : > { %720 = vst [vmem:[%s255_s6] sm:$0xff] %v719_v0 }
 0x39a   : > { %1018 = shalt.err (!%p1015_p7)
}
 0x39b   : > { %s1019_s16 = scalar_lea.hbm %s1291_s12, 128  ;;  %s1023_s27 = scalar_lea.hbm %s1340_s5, 256 }
 0x39c   : > { %p1020_p9 = scmp.ne.s32.totalorder %s1291_s12, %s1019_s16  ;;  %p1024_p0 = scmp.lt.u32.totalorder %s1291_s12, %s1340_s5 }
 0x39d   : > { %p1025_p1 = scmp.lt.u32.totalorder %s1023_s27, %s1019_s16  ;;  %p1027_p4 = scmp.lt.u32.totalorder %s1019_s16, %s1291_s12 }
 0x39e   : > { %p1021_p2 = pnand %p1020_p9, %p1210_p12 }
 0x39f   : > { %p1026_p11 = por %p1025_p1, %p1024_p0 }
 0x3a0   : > { %p1022_p5 = pneg %p1021_p2 }
 0x3a1   : > { %p1028_p6 = por %p1027_p4, %p1026_p11 }
 0x3a3   : > { %p1029_p8 = pnand %p1028_p6, %p1022_p5 }
 0x3a5   : > { %1032 = shalt.err (!%p1029_p8)
}
 0x3a6   : > { %883 = dma.vmem_to_hbm [thread:$0]  (%p1210_p12), %s1293_s7, 128, %s1291_s12, %s722_s10  }
 0x3a7 PF: > { %s747_s14 = sand.u32 1, %s1063_s18   ;;  %p1355_p10 = scmp.ne.s32.totalorder %s1345_s25, 0 }
 0x3a8   : > { %p1356_p13 = scmp.ge.s32.totalorder %s1075_s21, 2  ;;  %s748_s6 = scalar_lea.sflag [#allocation4], %s747_s14 }
 0x3aa   : > { %p894_p3 = pnand %p1356_p13, %p1355_p10 }
 0x3ac   : > { %1058 = dma.done.wait (!%p894_p3), %s748_s6, 128  }
 0x3ad   : > { %1060 = vsyncadd (!%p894_p3), %s748_s6, 4294967168  ;;  %p19_p7 = scmp.ge.s32.totalorder %s1175_s30, 4   ;;  %s1357_s18 = smov %s1067_s19 }
 0x3ae   : > { %s1358_s19 = smov %s1071_s20  ;;  %s1359_s20 = smov %s1206_s8 }
 0x3af   : > { %s1360_s21 = smov %s1175_s30  ;;  %21 = sbr.rel (!%p19_p7) target bundleno = 6 (0x6), region = 93 }
 0x3b6   :  { %753 = vsyncpa [#allocation3], 1 }
 0x3b7   :  { %755 = vsyncpa [#allocation3 + $0x1], 1 }
 0x3b8   :  { %756 = vsyncpa [#allocation6], 1 }
 0x3b9   :  { %757 = vsyncpa [#allocation4], 1 }
 0x3ba   :  { %759 = vsyncpa [#allocation4 + $0x1], 1 }

</bundles_post_ra>
